<compile_context>
chip_gen: v6e
topology: v6e:2x2x1
jax: 0.10.0
libtpu: 0.0.40
codegen_flags: <defaults>
</compile_context>

<pallas_src>
import functools

import jax
import jax.numpy as jnp
from jax import lax
from jax.experimental import pallas as pl
from jax.experimental.pallas import tpu as pltpu

_EPS = 1e-9


def _round_up(x, k):
    return ((x + k - 1) // k) * k


def _cdiv(a, b):
    return -(-a // b)


def _device_kind():
    try:
        return jax.devices()[0].device_kind.lower()
    except Exception:
        return ""


# ----------------------------------------------------------------------------
# Fused kernel: per-tile loss partial + debias + revisedY / new_target
# ----------------------------------------------------------------------------
def _make_fused_kernel(B, TB, eps=_EPS):
    inv_B = 1.0 / float(B)
    needs_row_mask = (B % TB) != 0

    def kernel(ow_ref, os_ref, tgt_ref, init_ref, invb_ref,
               newt_ref, loss_ref):
        ow = ow_ref[...].astype(jnp.float32)
        osx = os_ref[...].astype(jnp.float32)
        tgt = tgt_ref[...].astype(jnp.float32)
        init = init_ref[...].astype(jnp.float32)
        inv_bias = invb_ref[...].astype(jnp.float32)           # (1, C)

        # One exp pass gives both log_softmax and softmax; the exact reciprocal
        # is taken on the (TB,1) denominator only, then broadcast-multiplied.
        def log_softmax_and_softmax(x):
            mx = jnp.max(x, axis=1, keepdims=True)
            s = x - mx
            e = jnp.exp(s)
            denom = jnp.sum(e, axis=1, keepdims=True)          # (TB, 1)
            return s - jnp.log(denom), e * (1.0 / denom)

        lsw, pred_w = log_softmax_and_softmax(ow)
        lss, pred_s = log_softmax_and_softmax(osx)

        # supervised negative loss (the two logs fused into one)
        neg = (tgt == 0.0).astype(jnp.float32)
        sup = -neg * jnp.log((jnp.abs(1.0 - pred_w) + eps)
                             * (jnp.abs(1.0 - pred_s) + eps))

        # KL(target || softmax(out_w)) + KL(target || softmax(out_s)), batchmean
        safe_log_t = jnp.log(jnp.where(tgt > 0.0, tgt, 1.0))
        kl = jnp.where(tgt > 0.0, tgt * (2.0 * safe_log_t - lsw - lss), 0.0)

        contrib = sup + kl
        if needs_row_mask:  # partial last tile: rows past B are invalid
            row_ids = (pl.program_id(0) * TB
                       + lax.broadcasted_iota(jnp.int32, (TB, 1), 0))
            contrib = jnp.where(row_ids < B, contrib, 0.0)
        loss_ref[0, 0] = jnp.sum(contrib) * inv_B

        # debiased predictions (exact identity, no extra exp/log passes):
        #   softmax(x - log(bias+eps)) == normalize(softmax(x) / (bias+eps))
        pw = pred_w * inv_bias
        ps = pred_s * inv_bias
        pw = pw * (1.0 / jnp.sum(pw, axis=1, keepdims=True))
        ps = ps * (1.0 / jnp.sum(ps, axis=1, keepdims=True))

        revisedY = jnp.where(init > 0.0, 1.0, init)
        rY = (revisedY * ps) * (revisedY * pw)
        rY = rY * (1.0 / (jnp.sum(rY, axis=1, keepdims=True) + eps))
        rY = jnp.sqrt(rY)
        rY = rY * (1.0 / (jnp.sum(rY, axis=1, keepdims=True) + eps))
        newt_ref[...] = rY.astype(newt_ref.dtype)

    return kernel


# ----------------------------------------------------------------------------
# Cached, jitted step (pre-pass + gather + fused pallas_call + in-place scatter)
# ----------------------------------------------------------------------------
@functools.lru_cache(maxsize=None)
def _build_corr_step(B, C, D, m, update_target):
    eps = _EPS
    m = float(m)

    kind = _device_kind()
    is_v7 = "v7" in kind
    # generation-aware VMEM budget: v7x has 64 MiB physical per TC; v5e/v6e 128 MiB
    vmem_budget = (48 << 20) if is_v7 else (100 << 20)

    # ---- row-tile size: biggest that fits the budget; >= 2 tiles on v7x ----
    Cp = _round_up(max(C, 1), 128)                 # internal lane-padded width
    per_row_bytes = 4 * Cp * (2 * 5 + 10)          # 5 dbl-buffered streams + temps
    cap = max(8, min(1024, (vmem_budget // 2) // per_row_bytes))
    cap = max(8, (cap // 8) * 8)
    if is_v7 and B >= 16:
        cap = min(cap, max(8, _round_up(_cdiv(B, 2), 8)))   # use both TensorCores
    TB = B if B <= cap else cap                    # TB == B or multiple of 8
    num_tiles = _cdiv(B, TB)

    kernel = _make_fused_kernel(B, TB, eps)

    need = 4 * TB * Cp * (2 * 5 + 10) + 4 * Cp * 4 + (1 << 20)
    vmem_limit = int(min(max(need, 16 << 20), vmem_budget))

    row_spec = pl.BlockSpec((TB, C), lambda i: (i, 0))

    fused_call = pl.pallas_call(
        kernel,
        grid=(num_tiles,),
        in_specs=[row_spec, row_spec, row_spec, row_spec,
                  pl.BlockSpec((1, C), lambda i: (0, 0))],
        out_specs=(
            row_spec,                                             # new_target
            pl.BlockSpec((1, 1), lambda i: (i, 0),
                         memory_space=pltpu.MemorySpace.SMEM),    # per-tile loss
        ),
        out_shape=(
            jax.ShapeDtypeStruct((B, C), jnp.float32),
            jax.ShapeDtypeStruct((num_tiles, 1), jnp.float32),
        ),
        compiler_params=pltpu.CompilerParams(
            dimension_semantics=("parallel",),
            vmem_limit_bytes=vmem_limit),
    )

    def step(output_w, output_s, feat_w, feat_s,
             confidence, init_confidence, index, fc_w, fc_b, feat_mean_prev):
        # ---- tiny XLA pre-pass: feature EMA, fc matvec, bias softmax ----
        batch_mean = jnp.mean(
            (feat_w.astype(jnp.float32) + feat_s.astype(jnp.float32)) * 0.5,
            axis=0)
        feat_mean_new = (m * feat_mean_prev.astype(jnp.float32)
                         + (1.0 - m) * batch_mean)
        bias_logits = (jnp.dot(fc_w.astype(jnp.float32), feat_mean_new)
                       + fc_b.astype(jnp.float32))               # (C,)
        bias = jax.nn.softmax(bias_logits)
        inv_bias = (1.0 / (bias + eps)).reshape(1, C)

        # TODO(synk): fuse this row gather / scatter into the pallas_call via
        # PrefetchScalarGridSpec row-gather index_maps + input_output_aliases.
        tgt_rows = confidence[index, :].astype(jnp.float32)
        init_rows = init_confidence[index, :].astype(jnp.float32)

        new_target, loss_parts = fused_call(
            output_w.astype(jnp.float32), output_s.astype(jnp.float32),
            tgt_rows, init_rows, inv_bias)
        loss = jnp.sum(loss_parts)

        if update_target:
            new_confidence = confidence.at[index, :].set(
                new_target.astype(confidence.dtype))
            return loss, feat_mean_new, new_confidence
        return loss, feat_mean_new

    if update_target:
        # donate the (N,C) confidence table -> in-place scatter, no table copy
        return jax.jit(step, donate_argnums=(4,))
    return jax.jit(step)


# ----------------------------------------------------------------------------
# Stateful wrapper mirroring the PyTorch module's semantics
# ----------------------------------------------------------------------------
class CORRLossRECORDS:
    """`model.module.fc` of the reference is represented by (fc_w, fc_b):
    fc_w in torch nn.Linear layout (C, D), fc_b of shape (C,)."""

    def __init__(self, target, fc_w, fc_b, m=0.9):
        conf = jnp.asarray(target, jnp.float32)
        self.confidence = conf                       # (N, C) — donated each step
        self.init_confidence = jnp.copy(conf)        # independent buffer
        self.feat_mean = None                        # (D,)
        self.m = float(m)
        self.fc_w = jnp.asarray(fc_w, jnp.float32)   # (C, D)
        self.fc_b = jnp.asarray(fc_b, jnp.float32)   # (C,)
        self._C, self._D = int(self.fc_w.shape[0]), int(self.fc_w.shape[1])
        # NaN-check prints of the reference (torch.isnan + host print) are debug
        # side effects, not part of the math, and are not reproduced.

    def forward(self, output_w, output_s, feat_w, feat_s, index,
                update_target=True):
        B = int(output_w.shape[0])
        step = _build_corr_step(B, self._C, self._D, self.m, bool(update_target))
        fm_prev = (self.feat_mean if self.feat_mean is not None
                   else jnp.zeros((self._D,), jnp.float32))
        idx = jnp.asarray(index, jnp.int32)

        if update_target:
            loss, fm_new, new_conf = step(
                output_w, output_s, feat_w, feat_s,
                self.confidence, self.init_confidence, idx,
                self.fc_w, self.fc_b, fm_prev)
            self.confidence = new_conf
        else:
            loss, fm_new = step(
                output_w, output_s, feat_w, feat_s,
                self.confidence, self.init_confidence, idx,
                self.fc_w, self.fc_b, fm_prev)

        self.feat_mean = fm_new
        return loss

    __call__ = forward


if __name__ == "__main__":
    key = jax.random.PRNGKey(0)
    N, B, C, D = 32, 8, 16, 32   # dataset size, batch, classes, feature dim

    k1, k2, k3, k4, k5, k6, k7 = jax.random.split(key, 7)

    # partial-label style confidence table: candidate sets, row-normalized
    cand = (jax.random.uniform(k1, (N, C)) < 0.3).astype(jnp.float32)
    true_lab = jax.random.randint(k2, (N,), 0, C)
    cand = cand.at[jnp.arange(N), true_lab].set(1.0)
    confidence = cand / jnp.sum(cand, axis=1, keepdims=True)

    output_w = jax.random.normal(k3, (B, C), jnp.float32)
    output_s = jax.random.normal(k4, (B, C), jnp.float32)
    feat_w = jax.random.normal(k5, (B, D), jnp.float32)
    feat_s = jax.random.normal(k6, (B, D), jnp.float32)

    # synthetic fc (model.module.fc) parameters: Linear(D -> C)
    kw, kb = jax.random.split(k7)
    fc_w = jax.random.normal(kw, (C, D), jnp.float32) * 0.05
    fc_b = jax.random.normal(kb, (C,), jnp.float32) * 0.05

    index = jnp.arange(B, dtype=jnp.int32)

    module = CORRLossRECORDS(confidence, fc_w, fc_b, m=0.9)
    loss = module.forward(output_w, output_s, feat_w, feat_s, index,
                          update_target=True)
    jax.block_until_ready(loss)
    jax.block_until_ready(module.confidence)
    jax.block_until_ready(module.feat_mean)
    print("KERNEL_OK")
</pallas_src>

<mosaic_0001>
module attributes {stable_mosaic.version = 11 : i64} {
  func.func @kernel(%arg0: i32, %arg1: memref<8x16xf32, #tpu.memory_space<vmem>>, %arg2: memref<8x16xf32, #tpu.memory_space<vmem>>, %arg3: memref<8x16xf32, #tpu.memory_space<vmem>>, %arg4: memref<8x16xf32, #tpu.memory_space<vmem>>, %arg5: memref<1x16xf32, #tpu.memory_space<vmem>>, %arg6: memref<8x16xf32, #tpu.memory_space<vmem>>, %arg7: memref<1x1xf32, #tpu.memory_space<smem>>) attributes {dimension_semantics = [#tpu.dimension_semantics<parallel>], iteration_bounds = array<i64: 1>, scalar_prefetch = 0 : i64, scratch_operands = 0 : i64, tpu.core_type = #tpu.core_type<tc>, window_params = [{transform_indices = @transform_0, window_bounds = array<i64: 8, 16>}, {transform_indices = @transform_1, window_bounds = array<i64: 8, 16>}, {transform_indices = @transform_2, window_bounds = array<i64: 8, 16>}, {transform_indices = @transform_3, window_bounds = array<i64: 8, 16>}, {pipeline_mode = #tpu.pipeline_mode<synchronous>, transform_indices = @transform_4, window_bounds = array<i64: 1, 16>}, {transform_indices = @transform_5, window_bounds = array<i64: 8, 16>}, {transform_indices = @transform_6, window_bounds = array<i64: 1, 1>}]} {
    %c0 = arith.constant 0 : index
    %c0_0 = arith.constant 0 : index
    %0 = vector.load %arg1[%c0, %c0_0] : memref<8x16xf32, #tpu.memory_space<vmem>>, vector<8x16xf32>
    %c0_1 = arith.constant 0 : index
    %c0_2 = arith.constant 0 : index
    %1 = vector.load %arg2[%c0_1, %c0_2] : memref<8x16xf32, #tpu.memory_space<vmem>>, vector<8x16xf32>
    %c0_3 = arith.constant 0 : index
    %c0_4 = arith.constant 0 : index
    %2 = vector.load %arg3[%c0_3, %c0_4] : memref<8x16xf32, #tpu.memory_space<vmem>>, vector<8x16xf32>
    %c0_5 = arith.constant 0 : index
    %c0_6 = arith.constant 0 : index
    %3 = vector.load %arg4[%c0_5, %c0_6] : memref<8x16xf32, #tpu.memory_space<vmem>>, vector<8x16xf32>
    %c0_7 = arith.constant 0 : index
    %c0_8 = arith.constant 0 : index
    %4 = vector.load %arg5[%c0_7, %c0_8] : memref<1x16xf32, #tpu.memory_space<vmem>>, vector<1x16xf32>
    %cst = arith.constant dense<0xFF800000> : vector<8xf32>
    %5 = vector.multi_reduction <maximumf>, %0, %cst [1] : vector<8x16xf32> to vector<8xf32>
    %6 = vector.shape_cast %5 : vector<8xf32> to vector<8x1xf32>
    %7 = vector.broadcast %6 : vector<8x1xf32> to vector<8x16xf32>
    %8 = arith.subf %0, %7 : vector<8x16xf32>
    %9 = math.exp %8 : vector<8x16xf32>
    %cst_9 = arith.constant dense<0.000000e+00> : vector<8xf32>
    %10 = vector.multi_reduction <add>, %9, %cst_9 [1] : vector<8x16xf32> to vector<8xf32>
    %11 = vector.shape_cast %10 : vector<8xf32> to vector<8x1xf32>
    %12 = math.log %11 : vector<8x1xf32>
    %13 = vector.broadcast %12 : vector<8x1xf32> to vector<8x16xf32>
    %14 = arith.subf %8, %13 : vector<8x16xf32>
    %cst_10 = arith.constant 1.000000e+00 : f32
    %15 = vector.broadcast %cst_10 : f32 to vector<8x1xf32>
    %16 = arith.divf %15, %11 : vector<8x1xf32>
    %17 = vector.broadcast %16 : vector<8x1xf32> to vector<8x16xf32>
    %18 = arith.mulf %9, %17 : vector<8x16xf32>
    %cst_11 = arith.constant dense<0xFF800000> : vector<8xf32>
    %19 = vector.multi_reduction <maximumf>, %1, %cst_11 [1] : vector<8x16xf32> to vector<8xf32>
    %20 = vector.shape_cast %19 : vector<8xf32> to vector<8x1xf32>
    %21 = vector.broadcast %20 : vector<8x1xf32> to vector<8x16xf32>
    %22 = arith.subf %1, %21 : vector<8x16xf32>
    %23 = math.exp %22 : vector<8x16xf32>
    %cst_12 = arith.constant dense<0.000000e+00> : vector<8xf32>
    %24 = vector.multi_reduction <add>, %23, %cst_12 [1] : vector<8x16xf32> to vector<8xf32>
    %25 = vector.shape_cast %24 : vector<8xf32> to vector<8x1xf32>
    %26 = math.log %25 : vector<8x1xf32>
    %27 = vector.broadcast %26 : vector<8x1xf32> to vector<8x16xf32>
    %28 = arith.subf %22, %27 : vector<8x16xf32>
    %cst_13 = arith.constant 1.000000e+00 : f32
    %29 = vector.broadcast %cst_13 : f32 to vector<8x1xf32>
    %30 = arith.divf %29, %25 : vector<8x1xf32>
    %31 = vector.broadcast %30 : vector<8x1xf32> to vector<8x16xf32>
    %32 = arith.mulf %23, %31 : vector<8x16xf32>
    %cst_14 = arith.constant 0.000000e+00 : f32
    %33 = vector.broadcast %cst_14 : f32 to vector<8x16xf32>
    %34 = arith.cmpf oeq, %2, %33 : vector<8x16xf32>
    %35 = arith.extui %34 : vector<8x16xi1> to vector<8x16xi32>
    %36 = arith.sitofp %35 : vector<8x16xi32> to vector<8x16xf32>
    %cst_15 = arith.constant 0.000000e+00 : f32
    %37 = vector.broadcast %cst_15 : f32 to vector<8x16xf32>
    %38 = arith.subf %37, %36 : vector<8x16xf32>
    %cst_16 = arith.constant 1.000000e+00 : f32
    %39 = vector.broadcast %cst_16 : f32 to vector<8x16xf32>
    %40 = arith.subf %39, %18 : vector<8x16xf32>
    %41 = math.absf %40 : vector<8x16xf32>
    %cst_17 = arith.constant 9.99999971E-10 : f32
    %42 = vector.broadcast %cst_17 : f32 to vector<8x16xf32>
    %43 = arith.addf %41, %42 : vector<8x16xf32>
    %cst_18 = arith.constant 1.000000e+00 : f32
    %44 = vector.broadcast %cst_18 : f32 to vector<8x16xf32>
    %45 = arith.subf %44, %32 : vector<8x16xf32>
    %46 = math.absf %45 : vector<8x16xf32>
    %cst_19 = arith.constant 9.99999971E-10 : f32
    %47 = vector.broadcast %cst_19 : f32 to vector<8x16xf32>
    %48 = arith.addf %46, %47 : vector<8x16xf32>
    %49 = arith.mulf %43, %48 : vector<8x16xf32>
    %50 = math.log %49 : vector<8x16xf32>
    %51 = arith.mulf %38, %50 : vector<8x16xf32>
    %cst_20 = arith.constant 0.000000e+00 : f32
    %52 = vector.broadcast %cst_20 : f32 to vector<8x16xf32>
    %53 = arith.cmpf ogt, %2, %52 : vector<8x16xf32>
    %cst_21 = arith.constant 1.000000e+00 : f32
    %54 = vector.broadcast %cst_21 : f32 to vector<8x16xf32>
    %55 = arith.select %53, %2, %54 : vector<8x16xi1>, vector<8x16xf32>
    %56 = math.log %55 : vector<8x16xf32>
    %cst_22 = arith.constant 0.000000e+00 : f32
    %57 = vector.broadcast %cst_22 : f32 to vector<8x16xf32>
    %58 = arith.cmpf ogt, %2, %57 : vector<8x16xf32>
    %cst_23 = arith.constant 2.000000e+00 : f32
    %59 = vector.broadcast %cst_23 : f32 to vector<8x16xf32>
    %60 = arith.mulf %59, %56 : vector<8x16xf32>
    %61 = arith.subf %60, %14 : vector<8x16xf32>
    %62 = arith.subf %61, %28 : vector<8x16xf32>
    %63 = arith.mulf %2, %62 : vector<8x16xf32>
    %cst_24 = arith.constant 0.000000e+00 : f32
    %64 = vector.broadcast %cst_24 : f32 to vector<8x16xf32>
    %65 = arith.select %58, %63, %64 : vector<8x16xi1>, vector<8x16xf32>
    %66 = arith.addf %51, %65 : vector<8x16xf32>
    %67 = vector.shape_cast %66 : vector<8x16xf32> to vector<1x8x16xf32>
    %cst_25 = arith.constant dense<0.000000e+00> : vector<1xf32>
    %68 = vector.multi_reduction <add>, %67, %cst_25 [1, 2] : vector<1x8x16xf32> to vector<1xf32>
    %69 = vector.shape_cast %68 : vector<1xf32> to vector<1x1x1xf32>
    %70 = vector.extract %69[0, 0, 0] : f32 from vector<1x1x1xf32>
    %cst_26 = arith.constant 1.250000e-01 : f32
    %71 = arith.mulf %70, %cst_26 : f32
    %c0_27 = arith.constant 0 : index
    %c0_28 = arith.constant 0 : index
    %72 = memref.load %arg7[%c0_27, %c0_28] : memref<1x1xf32, #tpu.memory_space<smem>>
    memref.store %71, %arg7[%c0_27, %c0_28] : memref<1x1xf32, #tpu.memory_space<smem>>
    %73 = vector.broadcast %4 : vector<1x16xf32> to vector<8x16xf32>
    %74 = arith.mulf %18, %73 : vector<8x16xf32>
    %75 = vector.broadcast %4 : vector<1x16xf32> to vector<8x16xf32>
    %76 = arith.mulf %32, %75 : vector<8x16xf32>
    %cst_29 = arith.constant dense<0.000000e+00> : vector<8xf32>
    %77 = vector.multi_reduction <add>, %74, %cst_29 [1] : vector<8x16xf32> to vector<8xf32>
    %78 = vector.shape_cast %77 : vector<8xf32> to vector<8x1xf32>
    %cst_30 = arith.constant 1.000000e+00 : f32
    %79 = vector.broadcast %cst_30 : f32 to vector<8x1xf32>
    %80 = arith.divf %79, %78 : vector<8x1xf32>
    %81 = vector.broadcast %80 : vector<8x1xf32> to vector<8x16xf32>
    %82 = arith.mulf %74, %81 : vector<8x16xf32>
    %cst_31 = arith.constant dense<0.000000e+00> : vector<8xf32>
    %83 = vector.multi_reduction <add>, %76, %cst_31 [1] : vector<8x16xf32> to vector<8xf32>
    %84 = vector.shape_cast %83 : vector<8xf32> to vector<8x1xf32>
    %cst_32 = arith.constant 1.000000e+00 : f32
    %85 = vector.broadcast %cst_32 : f32 to vector<8x1xf32>
    %86 = arith.divf %85, %84 : vector<8x1xf32>
    %87 = vector.broadcast %86 : vector<8x1xf32> to vector<8x16xf32>
    %88 = arith.mulf %76, %87 : vector<8x16xf32>
    %cst_33 = arith.constant 0.000000e+00 : f32
    %89 = vector.broadcast %cst_33 : f32 to vector<8x16xf32>
    %90 = arith.cmpf ogt, %3, %89 : vector<8x16xf32>
    %cst_34 = arith.constant 1.000000e+00 : f32
    %91 = vector.broadcast %cst_34 : f32 to vector<8x16xf32>
    %92 = arith.select %90, %91, %3 : vector<8x16xi1>, vector<8x16xf32>
    %93 = arith.mulf %92, %88 : vector<8x16xf32>
    %94 = arith.mulf %92, %82 : vector<8x16xf32>
    %95 = arith.mulf %93, %94 : vector<8x16xf32>
    %cst_35 = arith.constant dense<0.000000e+00> : vector<8xf32>
    %96 = vector.multi_reduction <add>, %95, %cst_35 [1] : vector<8x16xf32> to vector<8xf32>
    %97 = vector.shape_cast %96 : vector<8xf32> to vector<8x1xf32>
    %cst_36 = arith.constant 9.99999971E-10 : f32
    %98 = vector.broadcast %cst_36 : f32 to vector<8x1xf32>
    %99 = arith.addf %97, %98 : vector<8x1xf32>
    %cst_37 = arith.constant 1.000000e+00 : f32
    %100 = vector.broadcast %cst_37 : f32 to vector<8x1xf32>
    %101 = arith.divf %100, %99 : vector<8x1xf32>
    %102 = vector.broadcast %101 : vector<8x1xf32> to vector<8x16xf32>
    %103 = arith.mulf %95, %102 : vector<8x16xf32>
    %104 = math.sqrt %103 : vector<8x16xf32>
    %cst_38 = arith.constant dense<0.000000e+00> : vector<8xf32>
    %105 = vector.multi_reduction <add>, %104, %cst_38 [1] : vector<8x16xf32> to vector<8xf32>
    %106 = vector.shape_cast %105 : vector<8xf32> to vector<8x1xf32>
    %cst_39 = arith.constant 9.99999971E-10 : f32
    %107 = vector.broadcast %cst_39 : f32 to vector<8x1xf32>
    %108 = arith.addf %106, %107 : vector<8x1xf32>
    %cst_40 = arith.constant 1.000000e+00 : f32
    %109 = vector.broadcast %cst_40 : f32 to vector<8x1xf32>
    %110 = arith.divf %109, %108 : vector<8x1xf32>
    %111 = vector.broadcast %110 : vector<8x1xf32> to vector<8x16xf32>
    %112 = arith.mulf %104, %111 : vector<8x16xf32>
    %c0_41 = arith.constant 0 : index
    %c0_42 = arith.constant 0 : index
    %113 = vector.load %arg6[%c0_41, %c0_42] : memref<8x16xf32, #tpu.memory_space<vmem>>, vector<8x16xf32>
    tpu.vector_store %arg6[%c0_41, %c0_42], %112 {strides = array<i32>} : memref<8x16xf32, #tpu.memory_space<vmem>>, vector<8x16xf32>,
    return
  }
  func.func @transform_0(%arg0: i32) -> (i32, i32) {
    %c0_i32 = arith.constant 0 : i32
    %c0_i32_0 = arith.constant 0 : i32
    return %arg0, %c0_i32 : i32, i32
  }
  func.func @transform_1(%arg0: i32) -> (i32, i32) {
    %c0_i32 = arith.constant 0 : i32
    %c0_i32_0 = arith.constant 0 : i32
    return %arg0, %c0_i32 : i32, i32
  }
  func.func @transform_2(%arg0: i32) -> (i32, i32) {
    %c0_i32 = arith.constant 0 : i32
    %c0_i32_0 = arith.constant 0 : i32
    return %arg0, %c0_i32 : i32, i32
  }
  func.func @transform_3(%arg0: i32) -> (i32, i32) {
    %c0_i32 = arith.constant 0 : i32
    %c0_i32_0 = arith.constant 0 : i32
    return %arg0, %c0_i32 : i32, i32
  }
  func.func @transform_4(%arg0: i32) -> (i32, i32) {
    %c0_i32 = arith.constant 0 : i32
    %c0_i32_0 = arith.constant 0 : i32
    %c0_i32_1 = arith.constant 0 : i32
    return %c0_i32, %c0_i32_0 : i32, i32
  }
  func.func @transform_5(%arg0: i32) -> (i32, i32) {
    %c0_i32 = arith.constant 0 : i32
    %c0_i32_0 = arith.constant 0 : i32
    return %arg0, %c0_i32 : i32, i32
  }
  func.func @transform_6(%arg0: i32) -> (i32, i32) {
    %c0_i32 = arith.constant 0 : i32
    %c0_i32_0 = arith.constant 0 : i32
    return %arg0, %c0_i32 : i32, i32
  }
}

</mosaic_0001>

<bundles_post_ra>
// kernel: step.1
= control target key start
LH: loop header
LB: loop body
LE: loop exit
PB: predicated region body
PF: predicated region fallthrough
CT: control target
= control target key end

     0   :  { %vm28_vm0 = vcmask 130048   ;;  %s272_s0 = inlined_call_operand.vmem [shape: f32[8,16], index: 0, kind: input, shape index: {}]   ;;  %s273_s1 = inlined_call_operand.vmem [shape: f32[8,16], index: 1, kind: input, shape index: {}]   ;;  %s274_s2 = inlined_call_operand.vmem [shape: f32[8,16], index: 2, kind: input, shape index: {}]   ;;  %s275_s3 = inlined_call_operand.vmem [shape: f32[8,16], index: 3, kind: input, shape index: {}]   ;;  %s276_s4 = inlined_call_operand.vmem [shape: f32[1,16], index: 4, kind: input, shape index: {}]   ;;  %s277_s5 = inlined_call_operand.vmem [shape: f32[8,16], index: 5, kind: output, shape index: {0}]   ;;  %s278_s6 = inlined_call_operand.hbm [shape: f32[1,1], index: 6, kind: output, shape index: {1}]  }
   0x1   :  { %v23_v0 = vld [vmem:[%s272_s0] sm:$0xff] }
   0x2   :  { %v24_v1 = vld [vmem:[%s273_s1] sm:$0xff] }
   0x3   :  { %12 = vsyncpa [#allocation3], 0  ;;  %v29_v2 = vsel %vm28_vm0, %v23_v0, -inf  ;;  %v44_v3 = vsel %vm28_vm0, %v24_v1, -inf  ;;  %v25_v15 = vld [vmem:[%s274_s2] sm:$0xff]  ;;  %v202_v44 = vmov 0.0  }
   0x4   :  { %30 = vmax.xlane.f32.xlu0 %v29_v2  ;;  %vm73_vm1 = vcmp.gt.f32.partialorder %v25_v15, 0.0  ;;  %v161_v19 = vld [vmem:[%s276_s4] ss:$0 sm:$0xff]  ;;  %vm59_vm2 = vcmp.eq.f32.partialorder %v25_v15, 0.0  ;;  %s203_s28 = smov [#allocation2]  }
   0x5   :  { %v74_v17 = vsel %vm73_vm1, %v25_v15, 1.0  ;;  %v160_v45 = vsel %vm59_vm2, 1.0, %v202_v44  ;;  %v26_v57 = vld [vmem:[%s275_s3] sm:$0xff] }
   0x6   :  { %v62_v47 = vsub.f32 0.0, %v160_v45  ;;  %vm116_vm3 = vcmp.gt.f32.partialorder %v26_v57, 0.0 }
   0x7   :  { %v117_v61 = vsel %vm116_vm3, 1.0, %v26_v57 }
   0x8   :  { %45 = vmax.xlane.f32.xlu0 %v44_v3 }
  0x8d   :  { %v31_v4 = vpop.xlane.xlu0 %30 }
  0x8e   :  { %v32_v5 = vsub.f32 %v23_v0, %v31_v4 }
  0x90   :  { %v33_v6 = vmul.f32 1.442695, %v32_v5 }
  0x91   :  { %v46_v7 = vpop.xlane.xlu0 %45 }
  0x92   :  { %166 = vpow2.f32 %v33_v6  ;;  %v47_v8 = vsub.f32 %v24_v1, %v46_v7 }
  0x94   :  { %v48_v9 = vmul.f32 1.442695, %v47_v8 }
  0x96   :  { %168 = vpow2.f32 %v48_v9 }
  0x9f   :  { %v167_v10 = vpop.eup %166 }
  0xa0   :  { %v35_v11 = vsel %vm28_vm0, %v167_v10, 0.0 }
  0xa1   :  { %36 = vadd.xlane.f32.xlu1 %v35_v11 }
  0xa3   :  { %v169_v12 = vpop.eup %168 }
  0xa4   :  { %v50_v13 = vsel %vm28_vm0, %v169_v12, 0.0 }
  0xa5   :  { %51 = vadd.xlane.f32.xlu1 %v50_v13 }
 0x12a   :  { %v37_v14 = vpop.xlane.xlu1 %36 }
 0x12b   :  { %170 = vrcp.f32 %v37_v14 }
 0x12e   :  { %v52_v16 = vpop.xlane.xlu1 %51 }
 0x12f   :  { %172 = vrcp.f32 %v52_v16 }
 0x130   :  { %174 = vlog2.f32 %v74_v17 }
 0x131   :  { %176 = vlog2.f32 %v37_v14 }
 0x132   :  { %178 = vlog2.f32 %v52_v16 }
 0x138   :  { %v171_v18 = vpop.eup %170 }
 0x139   :  { %v43_v20 = vmul.f32 %v171_v18, %v167_v10 }
 0x13b   :  { %v102_v21 = vmul.f32 %v161_v19, %v43_v20  ;;  %v63_v22 = vsub.f32 1.0, %v43_v20 }
 0x13c   :  { %v173_v23 = vpop.eup %172 }
 0x13d   :  { %v104_v24 = vsel %vm28_vm0, %v102_v21, 0.0  ;;  %v58_v25 = vmul.f32 %v173_v23, %v169_v12  ;;  %v64_v26 = vand.u32 2147483647, %v63_v22  ;;  %v175_v31 = vpop.eup %174 }
 0x13e   :  { %105 = vadd.xlane.f32.xlu0 %v104_v24  ;;  %v177_v32 = vpop.eup %176  ;;  %v76_v38 = vmul.f32 0.6931472, %v175_v31 }
 0x13f   :  { %v103_v27 = vmul.f32 %v161_v19, %v58_v25  ;;  %v66_v28 = vsub.f32 1.0, %v58_v25  ;;  %v65_v33 = vadd.f32 1e-09, %v64_v26  ;;  %v179_v35 = vpop.eup %178  ;;  %v39_v37 = vmul.f32 0.6931472, %v177_v32 }
 0x140   :  { %v54_v39 = vmul.f32 0.6931472, %v179_v35  ;;  %v77_v41 = vmul.f32 2.0, %v76_v38 }
 0x141   :  { %v110_v29 = vsel %vm28_vm0, %v103_v27, 0.0  ;;  %v67_v30 = vand.u32 2147483647, %v66_v28  ;;  %v40_v40 = vsub.f32 %v32_v5, %v39_v37 }
 0x142   :  { %111 = vadd.xlane.f32.xlu1 %v110_v29  ;;  %v55_v42 = vsub.f32 %v47_v8, %v54_v39 }
 0x143   :  { %v68_v34 = vadd.f32 1e-09, %v67_v30  ;;  %v78_v43 = vsub.f32 %v77_v41, %v40_v40 }
 0x145   :  { %v69_v36 = vmul.f32 %v68_v34, %v65_v33  ;;  %v79_v46 = vsub.f32 %v78_v43, %v55_v42 }
 0x147   :  { %180 = vlog2.f32 %v69_v36  ;;  %v80_v49 = vmul.f32 %v79_v46, %v25_v15 }
 0x149   :  { %v81_v52 = vsel %vm73_vm1, %v80_v49, 0.0 }
 0x154   :  { %v181_v48 = vpop.eup %180 }
 0x155   :  { %v71_v50 = vmul.f32 0.6931472, %v181_v48 }
 0x157   :  { %v72_v51 = vmul.f32 %v71_v50, %v62_v47 }
 0x159   :  { %v82_v53 = vadd.f32 %v81_v52, %v72_v51 }
 0x15b   :  { %v83_v54 = vsel %vm28_vm0, %v82_v53, 0.0 }
 0x15c   :  { %84 = vadd.xlane.f32.xlu1 %v83_v54 }
 0x1c7   :  { %v106_v55 = vpop.xlane.xlu0 %105 }
 0x1c8   :  { %182 = vrcp.f32 %v106_v55 }
 0x1cb   :  { %v112_v56 = vpop.xlane.xlu1 %111 }
 0x1cc   :  { %184 = vrcp.f32 %v112_v56 }
 0x1d5   :  { %v183_v58 = vpop.eup %182 }
 0x1d6   :  { %v109_v59 = vmul.f32 %v183_v58, %v102_v21 }
 0x1d8   :  { %v119_v0 = vmul.f32 %v117_v61, %v109_v59 }
 0x1d9   :  { %v185_v60 = vpop.eup %184 }
 0x1da   :  { %v115_v62 = vmul.f32 %v185_v60, %v103_v27 }
 0x1dc   :  { %v118_v63 = vmul.f32 %v117_v61, %v115_v62 }
 0x1de   :  { %v120_v1 = vmul.f32 %v119_v0, %v118_v63 }
 0x1e0   :  { %v121_v2 = vsel %vm28_vm0, %v120_v1, 0.0 }
 0x1e1   :  { %122 = vadd.xlane.f32.xlu0 %v121_v2 }
 0x1e5   :  { %v85_v3 = vpop.xlane.xlu1 %84 }
 0x1e6   :  { %v86_v4 = vrot.slane %v85_v3, 4 }
 0x1e8   :  { %v87_v5 = vadd.f32 %v86_v4, %v85_v3 }
 0x1ea   :  { %v88_v6 = vrot.slane %v87_v5, 2 }
 0x1ec   :  { %v89_v7 = vadd.f32 %v88_v6, %v87_v5 }
 0x1ee   :  { %v90_v8 = vrot.slane %v89_v7, 1 }
 0x1f0   :  { %v91_v9 = vadd.f32 %v90_v8, %v89_v7 }
 0x1f2   :  { %162 = vpush %v91_v9 }
 0x223   :  { %s163_s3 = spop %162 }
 0x224   :  { %s93_s27 = smul.f32 0.125, %s163_s3 }
 0x226   :  { %95 = sst [smem:[#allocation2]] %s93_s27 }
 0x227   :  { %152 = dma.smem_to_hbm %s203_s28, 16, %s278_s6, [#allocation3]  }
 0x26a   :  { %v123_v10 = vpop.xlane.xlu0 %122 }
 0x26b   :  { %v124_v11 = vadd.f32 1e-09, %v123_v10 }
 0x26d   :  { %186 = vrcp.f32 %v124_v11 }
 0x27a   :  { %v187_v12 = vpop.eup %186 }
 0x27b   :  { %v127_v13 = vmul.f32 %v187_v12, %v120_v1 }
 0x27d   :  { %188 = vrsqrt.f32 %v127_v13  ;;  %vm130_vm4 = vcmp.eq.f32.partialorder %v127_v13, inf  ;;  %v133_v16 = vand.u32 2147483648, %v127_v13  ;;  %vm132_vm5 = vcmp.eq.f32.partialorder %v127_v13, 0.0 }
 0x28a   :  { %v189_v14 = vpop.eup %188 }
 0x28b   :  { %v129_v15 = vmul.f32 %v189_v14, %v127_v13 }
 0x28d   :  { %v131_v17 = vsel %vm130_vm4, %v127_v13, %v129_v15 }
 0x28e   :  { %v134_v18 = vsel %vm132_vm5, %v133_v16, %v131_v17 }
 0x28f   :  { %v135_v19 = vsel %vm28_vm0, %v134_v18, 0.0 }
 0x290   :  { %136 = vadd.xlane.f32.xlu0 %v135_v19 }
 0x319   :  { %v137_v20 = vpop.xlane.xlu0 %136 }
 0x31a   :  { %v138_v21 = vadd.f32 1e-09, %v137_v20 }
 0x31c   :  { %190 = vrcp.f32 %v138_v21 }
 0x329   :  { %v191_v22 = vpop.eup %190 }
 0x32a   :  { %v141_v23 = vmul.f32 %v191_v22, %v134_v18 }
 0x32c   :  { %142 = vst.msk [vmem:[%s277_s5] sm:$0xff] %vm28_vm0, %v141_v23 }
 0x32d   :  { %200 = dma.done.wait [#allocation3], 16  }
 0x32e   :  { %201 = vsyncadd [#allocation3], 4294967280 }
 0x32f   :  { %158 = sfence }
 0x330   :  { %159 = vsyncpa [#allocation3], 1 }

</bundles_post_ra>
